<compile_context>
chip_gen: v7x
topology: tpu7x:2x2x1
jax: 0.10.0
libtpu: 0.0.40
codegen_flags: <defaults>
</compile_context>

<pallas_src>
import jax
import jax.numpy as jnp
from jax.experimental import pallas as pl
from jax.experimental.pallas import tpu as pltpu

_SUBLANE = 8  # vreg sublane width: row tiles kept multiples of this


def _round_up(x, m):
    return (x + m - 1) // m * m


def _cdiv(a, b):
    return -(-a // b)


def _vmem_budget_limit():
    """Per-generation VMEM budget/limit: big tiles on 128-MiB parts, safe on v7x."""
    cap = None
    try:
        cap = pltpu.get_tpu_info().vmem_capacity_bytes
    except Exception:
        cap = None
    if cap is not None and cap >= 128 * 1024 * 1024:
        return 96 << 20, 112 << 20       # v5e / v6e (128 MiB VMEM per core)
    return 40 << 20, 48 << 20            # v7x (64 MiB) or unknown: leave headroom


def mlp_kernel(x_ref, w1_ref, b1_ref, w2_ref, b2_ref, o_ref):
    # fc1: Linear(Din, 64) -> Sigmoid -> Linear(64, Dout); f32 accumulation throughout.
    h = jnp.dot(x_ref[...], w1_ref[...], preferred_element_type=jnp.float32) + b1_ref[...]
    h = jax.nn.sigmoid(h)                # exp lands on the (otherwise idle) EUP
    y = jnp.dot(h.astype(w2_ref.dtype), w2_ref[...],
                preferred_element_type=jnp.float32) + b2_ref[...]
    o_ref[...] = y.astype(o_ref.dtype)


def mlp_forward(x, w1, b1, w2, b2, *, tile_m_cap=4096):
    """Forward pass of Linear(Din,H) -> Sigmoid -> Linear(H,Dout) as one Pallas kernel.

    No feature-dim padding: every block's last two dims either are multiples of (8,128)
    (the row tile) or equal the full array dims (Din / H / Dout), which is legal.
    Only the batch is padded, minimally, to nsteps * tm; padding rows are sliced off.
    """
    B, Din = x.shape
    Din_w, H = w1.shape
    H_w, Dout = w2.shape
    assert Din == Din_w and H == H_w
    b1 = b1.reshape(1, H)
    b2 = b2.reshape(1, Dout)
    out_dtype = x.dtype

    xbytes = jnp.dtype(x.dtype).itemsize
    obytes = jnp.dtype(out_dtype).itemsize
    wbytes = jnp.dtype(w1.dtype).itemsize
    budget, limit = _vmem_budget_limit()

    # Resident weights + biases (single block, constant index_map -> loaded once).
    w_foot = (Din * H + H * Dout) * wbytes + (H + Dout) * 4

    def vmem_bytes(tm):
        x_buf = 2 * tm * Din * xbytes        # double-buffered x tiles
        o_buf = 2 * tm * Dout * obytes       # double-buffered out tiles
        inter = tm * (H + Dout) * 4          # f32 hidden / accumulator values
        return x_buf + o_buf + w_foot + inter

    # ---- choose the batch tile ---------------------------------------------------
    # Large tiles amortize the ~0.35us/step grid overhead; clamp against the VMEM
    # budget (ignoring nothing big: unpadded per-row footprint is only ~0.6 KB f32).
    tm_cap = max(_SUBLANE, _round_up(min(tile_m_cap, B), _SUBLANE))
    while tm_cap > _SUBLANE and vmem_bytes(tm_cap) > budget:
        tm_cap = max(_SUBLANE, _round_up(tm_cap // 2, _SUBLANE))

    # Minimal batch padding: pick the step count first, then the tile. Prefer >=4
    # (even) steps when the batch allows it so each v7x TensorCore gets >=2 steps
    # and can overlap its input DMA / output writeback with compute.
    nsteps = _cdiv(B, tm_cap)
    if B >= 4 * _SUBLANE:
        nsteps = max(nsteps, 4)
    elif B >= 2 * _SUBLANE:
        nsteps = max(nsteps, 2)
    if nsteps > 1 and nsteps % 2:
        nsteps += 1
    tm = _round_up(_cdiv(B, nsteps), _SUBLANE)
    b_p = nsteps * tm                        # pad waste < nsteps * 8 rows

    x_p = x if b_p == B else jnp.pad(x, ((0, b_p - B), (0, 0)))

    out = pl.pallas_call(
        mlp_kernel,
        out_shape=jax.ShapeDtypeStruct((b_p, Dout), out_dtype),
        grid_spec=pltpu.PrefetchScalarGridSpec(
            num_scalar_prefetch=0,
            grid=(nsteps,),
            in_specs=[
                pl.BlockSpec((tm, Din), lambda i: (i, 0)),   # x tile (streams over batch)
                pl.BlockSpec((Din, H), lambda i: (0, 0)),    # W1 (resident)
                pl.BlockSpec((1, H), lambda i: (0, 0)),      # b1 (resident)
                pl.BlockSpec((H, Dout), lambda i: (0, 0)),   # W2 (resident)
                pl.BlockSpec((1, Dout), lambda i: (0, 0)),   # b2 (resident)
            ],
            out_specs=pl.BlockSpec((tm, Dout), lambda i: (i, 0)),
        ),
        compiler_params=pltpu.CompilerParams(
            dimension_semantics=("parallel",),
            vmem_limit_bytes=limit,
        ),
    )(x_p, w1, b1, w2, b2)

    return out if b_p == B else out[:B]


def init_params(key, din, hidden, dout, dtype=jnp.float32):
    # Deterministic init mimicking PyTorch Linear default (uniform +-1/sqrt(fan_in)).
    k1, k2, k3, k4 = jax.random.split(key, 4)
    lim1 = 1.0 / jnp.sqrt(din)
    lim2 = 1.0 / jnp.sqrt(hidden)
    w1 = jax.random.uniform(k1, (din, hidden), dtype, -lim1, lim1)
    b1 = jax.random.uniform(k2, (hidden,), dtype, -lim1, lim1)
    w2 = jax.random.uniform(k3, (hidden, dout), dtype, -lim2, lim2)
    b2 = jax.random.uniform(k4, (dout,), dtype, -lim2, lim2)
    return w1, b1, w2, b2


def _reference(x, w1, b1, w2, b2):
    return jax.nn.sigmoid(x @ w1 + b1.reshape(1, -1)) @ w2 + b2.reshape(1, -1)


if __name__ == "__main__":
    # Shapes implied by the module: Din = train_x.shape[1], hidden = 64, Dout = train_y.shape[1].
    Din, H, Dout = 32, 64, 8
    key = jax.random.PRNGKey(0)
    kx, kp, kx2 = jax.random.split(key, 3)
    w1, b1, w2, b2 = init_params(kp, Din, H, Dout)

    # Small-batch f32 check (single grid step, no padding at all).
    x_small = jax.random.normal(kx, (8, Din), jnp.float32)
    out = mlp_forward(x_small, w1, b1, w2, b2)
    jax.block_until_ready(out)
    ref = _reference(x_small, w1, b1, w2, b2)
    assert out.shape == (8, Dout)
    assert jnp.allclose(out, ref, atol=1e-5, rtol=1e-5)

    # Larger batch not divisible by the sublane tile: exercises minimal batch padding
    # (300 -> 320 rows, 4 grid steps of 80 rows) and the multi-step / v7x path.
    x_big = jax.random.normal(kx2, (300, Din), jnp.float32)
    out_big = mlp_forward(x_big, w1, b1, w2, b2)
    jax.block_until_ready(out_big)
    ref_big = _reference(x_big, w1, b1, w2, b2)
    assert out_big.shape == (300, Dout)
    assert jnp.allclose(out_big, ref_big, atol=1e-5, rtol=1e-5)

    print("KERNEL_OK")
</pallas_src>

<mosaic_0001>
module attributes {stable_mosaic.version = 11 : i64} {
  func.func @mlp_kernel(%arg0: i32, %arg1: memref<8x32xf32, #tpu.memory_space<vmem>>, %arg2: memref<32x64xf32, #tpu.memory_space<vmem>>, %arg3: memref<1x64xf32, #tpu.memory_space<vmem>>, %arg4: memref<64x8xf32, #tpu.memory_space<vmem>>, %arg5: memref<1x8xf32, #tpu.memory_space<vmem>>, %arg6: memref<8x8xf32, #tpu.memory_space<vmem>>) attributes {dimension_semantics = [#tpu.dimension_semantics<parallel>], iteration_bounds = array<i64: 1>, scalar_prefetch = 0 : i64, scratch_operands = 0 : i64, tpu.core_type = #tpu.core_type<tc>, window_params = [{transform_indices = @transform_0, window_bounds = array<i64: 8, 32>}, {pipeline_mode = #tpu.pipeline_mode<synchronous>, transform_indices = @transform_1, window_bounds = array<i64: 32, 64>}, {pipeline_mode = #tpu.pipeline_mode<synchronous>, transform_indices = @transform_2, window_bounds = array<i64: 1, 64>}, {pipeline_mode = #tpu.pipeline_mode<synchronous>, transform_indices = @transform_3, window_bounds = array<i64: 64, 8>}, {pipeline_mode = #tpu.pipeline_mode<synchronous>, transform_indices = @transform_4, window_bounds = array<i64: 1, 8>}, {transform_indices = @transform_5, window_bounds = array<i64: 8, 8>}]} {
    %c0 = arith.constant 0 : index
    %c0_0 = arith.constant 0 : index
    %0 = vector.load %arg1[%c0, %c0_0] : memref<8x32xf32, #tpu.memory_space<vmem>>, vector<8x32xf32>
    %c0_1 = arith.constant 0 : index
    %c0_2 = arith.constant 0 : index
    %1 = vector.load %arg2[%c0_1, %c0_2] : memref<32x64xf32, #tpu.memory_space<vmem>>, vector<32x64xf32>
    %cst = arith.constant dense<0.000000e+00> : vector<8x64xf32>
    %2 = tpu.matmul %0, %1, %cst {dimension_numbers = #tpu.dot_dimension_numbers<[1], [0], [0], [1], [0, 0, 1, 1], [], []>} : vector<8x32xf32>, vector<32x64xf32>, vector<8x64xf32> -> vector<8x64xf32>
    %c0_3 = arith.constant 0 : index
    %c0_4 = arith.constant 0 : index
    %3 = vector.load %arg3[%c0_3, %c0_4] : memref<1x64xf32, #tpu.memory_space<vmem>>, vector<1x64xf32>
    %4 = vector.broadcast %3 : vector<1x64xf32> to vector<8x64xf32>
    %5 = arith.addf %2, %4 : vector<8x64xf32>
    %6 = arith.negf %5 : vector<8x64xf32>
    %7 = math.exp %6 : vector<8x64xf32>
    %cst_5 = arith.constant 1.000000e+00 : f32
    %8 = vector.broadcast %cst_5 : f32 to vector<8x64xf32>
    %9 = arith.addf %8, %7 : vector<8x64xf32>
    %10 = arith.divf %8, %9 : vector<8x64xf32>
    %c0_6 = arith.constant 0 : index
    %c0_7 = arith.constant 0 : index
    %11 = vector.load %arg4[%c0_6, %c0_7] : memref<64x8xf32, #tpu.memory_space<vmem>>, vector<64x8xf32>
    %cst_8 = arith.constant dense<0.000000e+00> : vector<8x8xf32>
    %12 = tpu.matmul %10, %11, %cst_8 {dimension_numbers = #tpu.dot_dimension_numbers<[1], [0], [0], [1], [0, 0, 1, 1], [], []>} : vector<8x64xf32>, vector<64x8xf32>, vector<8x8xf32> -> vector<8x8xf32>
    %c0_9 = arith.constant 0 : index
    %c0_10 = arith.constant 0 : index
    %13 = vector.load %arg5[%c0_9, %c0_10] : memref<1x8xf32, #tpu.memory_space<vmem>>, vector<1x8xf32>
    %14 = vector.broadcast %13 : vector<1x8xf32> to vector<8x8xf32>
    %15 = arith.addf %12, %14 : vector<8x8xf32>
    %c0_11 = arith.constant 0 : index
    %c0_12 = arith.constant 0 : index
    %16 = vector.load %arg6[%c0_11, %c0_12] : memref<8x8xf32, #tpu.memory_space<vmem>>, vector<8x8xf32>
    tpu.vector_store %arg6[%c0_11, %c0_12], %15 {strides = array<i32>} : memref<8x8xf32, #tpu.memory_space<vmem>>, vector<8x8xf32>,
    return
  }
  func.func @transform_0(%arg0: i32) -> (i32, i32) {
    %c0_i32 = arith.constant 0 : i32
    %c0_i32_0 = arith.constant 0 : i32
    return %arg0, %c0_i32 : i32, i32
  }
  func.func @transform_1(%arg0: i32) -> (i32, i32) {
    %c0_i32 = arith.constant 0 : i32
    %c0_i32_0 = arith.constant 0 : i32
    %c0_i32_1 = arith.constant 0 : i32
    return %c0_i32, %c0_i32_0 : i32, i32
  }
  func.func @transform_2(%arg0: i32) -> (i32, i32) {
    %c0_i32 = arith.constant 0 : i32
    %c0_i32_0 = arith.constant 0 : i32
    %c0_i32_1 = arith.constant 0 : i32
    return %c0_i32, %c0_i32_0 : i32, i32
  }
  func.func @transform_3(%arg0: i32) -> (i32, i32) {
    %c0_i32 = arith.constant 0 : i32
    %c0_i32_0 = arith.constant 0 : i32
    %c0_i32_1 = arith.constant 0 : i32
    return %c0_i32, %c0_i32_0 : i32, i32
  }
  func.func @transform_4(%arg0: i32) -> (i32, i32) {
    %c0_i32 = arith.constant 0 : i32
    %c0_i32_0 = arith.constant 0 : i32
    %c0_i32_1 = arith.constant 0 : i32
    return %c0_i32, %c0_i32_0 : i32, i32
  }
  func.func @transform_5(%arg0: i32) -> (i32, i32) {
    %c0_i32 = arith.constant 0 : i32
    %c0_i32_0 = arith.constant 0 : i32
    return %arg0, %c0_i32 : i32, i32
  }
}

</mosaic_0001>

<bundles_post_ra>
// kernel: tpu_custom_call.1
= control target key start
LH: loop header
LB: loop body
LE: loop exit
PB: predicated region body
PF: predicated region fallthrough
CT: control target
= control target key end

     0   :  { %v317_v3 = vmov 0.0|0.0   ;;  %vm318_vm0 = vmmov 0   ;;  %v319_v6 = vmov 0.0   ;;  %s408_s0 = inlined_call_operand.vmem [shape: f32[8,32], index: 0, kind: input, shape index: {}]   ;;  %s409_s1 = inlined_call_operand.vmem [shape: f32[32,64], index: 1, kind: input, shape index: {}]   ;;  %s410_s2 = inlined_call_operand.vmem [shape: f32[1,64], index: 2, kind: input, shape index: {}]   ;;  %s411_s3 = inlined_call_operand.vmem [shape: f32[64,8], index: 3, kind: input, shape index: {}]   ;;  %s412_s4 = inlined_call_operand.vmem [shape: f32[1,8], index: 4, kind: input, shape index: {}]   ;;  %s413_s5 = inlined_call_operand.hbm [shape: f32[8,8], index: 5, kind: output, shape index: {}]  }
   0x1   :  { %v22_v0 = vld [vmem:[%s409_s1] sm:$0xff]  ;;  %v23_v1 = vld [vmem:[%s409_s1 + $0x8] sm:$0xff]  ;;  %v24_v2 = vld [vmem:[%s409_s1 + $0x10] sm:$0xff]  ;;  %267 = vmatprep.subr.bf16.mxu0 %v317_v3  ;;  %245 = vmatprep.mubr.msk.f32.mxu0 %vm318_vm0, %v319_v6 }
   0x2   :  { %v268_v4 = vpack.c.bf16 %v23_v1, %v22_v0  ;;  %v25_v5 = vld [vmem:[%s409_s1 + $0x18] sm:$0xff]  ;;  %273 = vmatprep.subr.bf16.mxu1 %v317_v3  ;;  %264 = vmatprep.mubr.msk.f32.mxu1 %vm318_vm0, %v319_v6 }
   0x3   :  { %10 = vsyncpa [#allocation3], 0  ;;  %v271_v7 = vpack.c.bf16 %v25_v5, %v24_v2  ;;  %v21_v8 = vld [vmem:[%s408_s0] sm:$0xff]  ;;  %vm33_vm1 = vcmask 261120   ;;  %v114_v10 = vld [vmem:[%s411_s3 + $0x8] sm:$0xff]  ;;  %vm128_vm2 = vcmask 523264  }
   0x4   :  { %269 = vmatpush3.bf16.msra.mxu0 %v268_v4  ;;  %v113_v9 = vld [vmem:[%s411_s3] sm:$0xff]  ;;  %v115_v12 = vld [vmem:[%s411_s3 + $0x10] sm:$0xff]  ;;  %v116_v13 = vld [vmem:[%s411_s3 + $0x18] sm:$0xff]  ;;  %s320_s20 = smov [#allocation2]   ;;  %vm202_vm3 = vcmask 64512  }
   0x5   :  { %270 = vmatprep.subr.bf16.mxu0 %v317_v3  ;;  %v274_v11 = vpack.c.bf16 %v114_v10, %v113_v9  ;;  %v277_v14 = vpack.c.bf16 %v116_v13, %v115_v12  ;;  %v117_v15 = vld [vmem:[%s411_s3 + $0x20] sm:$0xff]  ;;  %v118_v16 = vld [vmem:[%s411_s3 + $0x28] sm:$0xff]  ;;  %v119_v18 = vld [vmem:[%s411_s3 + $0x30] sm:$0xff]  ;;  %s210_s21 = sshll.u32 %s320_s20, 4  ;;  %s211_s21 = int_to_ptr.vmem [resolvable:$true] %s210_s21 }
   0x6   :  { %v280_v17 = vpack.c.bf16 %v118_v16, %v117_v15  ;;  %v120_v19 = vld [vmem:[%s411_s3 + $0x38] sm:$0xff]  ;;  %v218_v21 = vld [vmem:[%s410_s2] ss:$0 sm:$0xff]  ;;  %s293_s2 = scalar_lea.vmem %s211_s21, 128  ;;  %p298_p1 = scmp.lt.s32.totalorder %s211_s21, %s211_s21 }
   0x7   :  { %275 = vmatpush3.bf16.msra.mxu1 %v274_v11  ;;  %v283_v20 = vpack.c.bf16 %v120_v19, %v119_v18  ;;  %v221_v29 = vld [vmem:[%s412_s4] ss:$0 sm:$0xff]  ;;  %p294_p0 = scmp.ne.s32.totalorder %s211_s21, %s293_s2  ;;  %p299_p2 = scmp.lt.s32.totalorder %s293_s2, %s293_s2 }
   0x8   :  { %272 = vmatpush3.bf16.msra.mxu0 %v271_v7  ;;  %276 = vmatprep.subr.bf16.mxu1 %v317_v3 }
   0x9   :  { %p300_p3 = por %p299_p2, %p298_p1 }
   0xb   :  { %246 = vmatmul.mubr.msk.f32.vlgmr.msra.gmra.mrb[0].mxu0 %vm33_vm1, %v21_v8  ;;  %278 = vmatpush3.bf16.msra.mxu1 %v277_v14  ;;  %p301_p4 = pnand %p300_p3, %p294_p0 }
   0xc   :  { %279 = vmatprep.subr.bf16.mxu1 %v317_v3 }
   0xf   :  { %281 = vmatpush3.bf16.msra.mxu1 %v280_v17 }
  0x10   :  { %282 = vmatprep.subr.bf16.mxu1 %v317_v3 }
  0x13   :  { %284 = vmatpush3.bf16.msra.mxu1 %v283_v20 }
  0xde   :  { %v103_v22 = vpop.f32.mrb[0].mxu0 }
  0xdf   :  { %v104_v23 = vadd.f32 %v218_v21, %v103_v22  ;;  %v247_v24 = vpop.f32.mrb[1].mxu0 }
  0xe1   :  { %v220_v25 = vmul.f32 -1.442695, %v104_v23 }
  0xe3   :  { %289 = vpow2.f32 %v220_v25 }
  0xed   :  { %v290_v26 = vpop.eup %289 }
  0xee   :  { %v110_v27 = vadd.f32 1.0, %v290_v26 }
  0xf0   :  { %291 = vrcp.f32 %v110_v27 }
  0xfa   :  { %v292_v28 = vpop.eup %291 }
  0xfb   :  { %265 = vmatmul.mubr.msk.f32.vlgmr.msra.gmra.mrb[0].mxu1 %vm128_vm2, %v292_v28 }
 0x1ce   :  { %v198_v30 = vpop.f32.mrb[0].mxu1 }
 0x1cf   :  { %v199_v31 = vadd.f32 %v221_v29, %v198_v30  ;;  %v266_v32 = vpop.f32.mrb[1].mxu1 }
 0x1d1   :  { %203 = vst.msk [vmem:[#allocation2] sm:$0xff] %vm202_vm3, %v199_v31 }
 0x1d2   :  { %304 = shalt.err (!%p301_p4)
}
 0x1d3   :  { %s305_s24 = scalar_lea.hbm %s413_s5, 128 }
 0x1d4   :  { %p306_p5 = scmp.ne.s32.totalorder %s413_s5, %s305_s24  ;;  %p309_p6 = scmp.lt.u32.totalorder %s305_s24, %s413_s5 }
 0x1d6   :  { %p311_p7 = pnand %p309_p6, %p306_p5 }
 0x1d8   :  { %314 = shalt.err (!%p311_p7)
}
 0x1d9   :  { %213 = dma.vmem_to_hbm [thread:$0]  %s211_s21, 128, %s413_s5, [#allocation3]  }
 0x1da   :  { %315 = dma.done.wait [#allocation3], 128  }
 0x1db   :  { %316 = vsyncadd [#allocation3], 4294967168 }
 0x1dc   :  { %217 = vsyncpa [#allocation3], 1 }

</bundles_post_ra>
